<compile_context>
chip_gen: v6e
topology: v6e:2x2x1
jax: 0.10.0
libtpu: 0.0.40
codegen_flags: <defaults>
</compile_context>

<pallas_src>
import jax
import jax.numpy as jnp
from jax.experimental import pallas as pl
from jax.experimental.pallas import tpu as pltpu


# ----------------------------------------------------------------------------
# Init-time buffer construction (mirrors the PyTorch __init__; plain JAX glue,
# runs once like register_buffer -- not part of the hot path).
# ----------------------------------------------------------------------------
def _create_c(nf):
    hnf = nf // 2
    cp_x = jnp.linspace(-1.0, 1.0, hnf)
    cp_y_top = -jnp.ones((hnf,))
    cp_y_bottom = jnp.ones((hnf,))
    cp_top = jnp.stack([cp_x, cp_y_top], axis=1)
    cp_bottom = jnp.stack([cp_x, cp_y_bottom], axis=1)
    return jnp.concatenate([cp_top, cp_bottom], axis=0)  # (nf, 2)


def _create_p(ir_width, ir_height):
    gx = (jnp.arange(-ir_width, ir_width, 2) + 1.0) / ir_width     # (W,)
    gy = (jnp.arange(-ir_height, ir_height, 2) + 1.0) / ir_height  # (H,)
    # torch.meshgrid's (legacy) default is 'ij' indexing, so indexing='ij'
    # reproduces the PyTorch module's flattened grid-point ordering exactly.
    mx, my = jnp.meshgrid(gx, gy, indexing="ij")                   # (W, H) each
    return jnp.stack([mx, my], axis=2).reshape(-1, 2)              # (W*H, 2)


def _create_p_hat(nf, c, p, eps):
    n = p.shape[0]
    p_diff = p[:, None, :] - c[None, :, :]          # (n, nf, 2)
    rbf_norm = jnp.linalg.norm(p_diff, axis=2)      # (n, nf)
    rbf = jnp.square(rbf_norm) * jnp.log(rbf_norm + eps)
    return jnp.concatenate([jnp.ones((n, 1)), p, rbf], axis=1).astype(jnp.float32)


def _create_inv_delta_c(nf, c):
    d = jnp.linalg.norm(c[:, None, :] - c[None, :, :], axis=2)     # (nf, nf)
    c_hat = jnp.where(jnp.eye(nf, dtype=bool), 1.0, d)             # diag := 1
    c_hat = c_hat ** 2 * jnp.log(c_hat)
    delta_c = jnp.concatenate(
        [
            jnp.concatenate([jnp.ones((nf, 1)), c, c_hat], axis=1),           # (nf, nf+3)
            jnp.concatenate([jnp.zeros((2, 3)), c.T], axis=1),                # (2,  nf+3)
            jnp.concatenate([jnp.zeros((1, 3)), jnp.ones((1, nf))], axis=1),  # (1,  nf+3)
        ],
        axis=0,
    ).astype(jnp.float32)
    return jnp.linalg.inv(delta_c)                                 # (nf+3, nf+3)


def build_interleaved_weight(p_hat, inv_delta_c, nf):
    """Folded, input-independent weight, pre-interleaved for x/y-paired output.

        W    = (p_hat @ inv_delta_c)[:, :nf]          (N, nf)
        W_il = kron(W^T, I_2)                         (2*nf, 2*N)

    so that   flat_out[b, 2n+d] = sum_k p_prime[b,k,d] * W[n,k]
            = (row-major flat p_prime[b]) @ W_il.
    (The trailing 3 columns of p_hat @ inv_delta_c never contribute because
    the last 3 rows of [p_prime; 0] are zero -- the original two-bmm fold.)
    """
    w = (p_hat @ inv_delta_c)[:, :nf]                      # (N, nf)
    w_il = jnp.kron(w.T, jnp.eye(2, dtype=w.dtype))        # (2*nf, 2*N)
    return jnp.asarray(w_il, dtype=jnp.float32)


# ----------------------------------------------------------------------------
# Pallas kernel: out[b, :] = sum_j p_prime_flat[b, j] * W_il[j, :]
# (2*B*nf scalar-broadcast FMAs on the VPU; no MXU, no grid on the fast path).
# ----------------------------------------------------------------------------
def grid_gen_kernel(pp_ref, w_ref, out_ref):
    """pp_ref : SMEM (B, 2*nf)  -- p_prime[b] flattened row-major (entry 2k+d).
       w_ref  : VMEM (2*nf, Ln) -- interleaved folded weight (Ln = 2*N or a tile).
       out_ref: VMEM (B, Ln)    -- already x/y-interleaved along lanes."""
    b_rows, k2 = pp_ref.shape
    for b in range(b_rows):                        # B=2: fully unrolled, static
        acc = pp_ref[b, 0] * w_ref[0:1, :]         # (1, Ln), lane-dense
        for j in range(1, k2):                     # 2*nf scalar-broadcast FMAs
            acc = acc + pp_ref[b, j] * w_ref[j:j + 1, :]
        out_ref[b:b + 1, :] = acc


# Conservative per-call VMEM budget: stays well inside the 32 MiB default
# scoped limit that also holds on v7x's 64 MiB part (v5e/v6e have 128 MiB).
_SINGLE_BLOCK_VMEM_BYTES = 8 * 1024 * 1024


def grid_generator_forward(p_prime, w_il):
    """p_prime: (B, nf, 2) float -> (B, N, 2) float32 (same semantics as torch)."""
    B, nf, two = p_prime.shape
    assert two == 2
    k2, n2 = w_il.shape
    assert k2 == 2 * nf
    N = n2 // 2

    # Row-major flatten (B, nf, 2) -> (B, 2*nf): contiguous view, no transpose,
    # no data movement.  Tens of scalars; delivered straight to SMEM.
    pp_flat = p_prime.astype(jnp.float32).reshape(B, k2)

    vmem_bytes = (k2 * n2 + B * n2) * 4
    if vmem_bytes <= _SINGLE_BLOCK_VMEM_BYTES or n2 % 128 != 0:
        # Fast path: one invocation, no grid, whole-array refs, no pipelining.
        out_flat = pl.pallas_call(
            grid_gen_kernel,
            out_shape=jax.ShapeDtypeStruct((B, n2), jnp.float32),
            in_specs=[
                pl.BlockSpec(memory_space=pltpu.MemorySpace.SMEM),
                pl.BlockSpec(memory_space=pltpu.MemorySpace.VMEM),
            ],
            out_specs=pl.BlockSpec(memory_space=pltpu.MemorySpace.VMEM),
        )(pp_flat, w_il)
    else:
        # Large-N fallback (v7x 64 MiB VMEM): lane-tile the interleaved axis.
        tile = 2048
        while n2 % tile:          # n2 % 128 == 0 guaranteed on this branch
            tile //= 2
        out_flat = pl.pallas_call(
            grid_gen_kernel,
            out_shape=jax.ShapeDtypeStruct((B, n2), jnp.float32),
            grid_spec=pl.GridSpec(
                grid=(n2 // tile,),
                in_specs=[
                    pl.BlockSpec((B, k2), lambda i: (0, 0),
                                 memory_space=pltpu.MemorySpace.SMEM),
                    pl.BlockSpec((k2, tile), lambda i: (0, i)),
                ],
                out_specs=pl.BlockSpec((B, tile), lambda i: (0, i)),
            ),
            compiler_params=pltpu.CompilerParams(
                # Tiles here are >= 512 lanes of real work, so a cross-TC
                # split is worthwhile (harmless on single-TC v5e/v6e).
                dimension_semantics=("parallel",),
            ),
        )(pp_flat, w_il)

    # The kernel output is already x/y-interleaved, so restoring the module's
    # (B, N, 2) layout is a free contiguous reshape (no transpose).
    return out_flat.reshape(B, N, 2)


# ----------------------------------------------------------------------------
if __name__ == "__main__":
    nf = 8
    imrec_size = (16, 16)   # (height, width)
    eps = 1e-6
    batch = 2

    ir_height, ir_width = imrec_size
    c = _create_c(nf)                            # (nf, 2)
    p = _create_p(ir_width, ir_height)           # (N, 2), N = W*H = 256
    p_hat = _create_p_hat(nf, c, p, eps)         # (N, nf+3)
    inv_delta_c = _create_inv_delta_c(nf, c)     # (nf+3, nf+3)

    # Folded, pre-interleaved, input-independent weight (built once at init,
    # like register_buffer).
    w_il = build_interleaved_weight(p_hat, inv_delta_c, nf)   # (2*nf, 2*N)

    key = jax.random.PRNGKey(0)
    p_prime = jax.random.normal(key, (batch, nf, 2), dtype=jnp.float32)

    out = grid_generator_forward(p_prime, w_il)
    out = jax.block_until_ready(out)

    # Reference: the ORIGINAL two-bmm formulation of the torch forward
    # (also validates the fold + kron interleave).
    cpz = jnp.concatenate([p_prime, jnp.zeros((batch, 3, 2), jnp.float32)], axis=1)
    t_ref = jnp.einsum("ij,bjk->bik", inv_delta_c, cpz)
    ref = jnp.einsum("nj,bjk->bnk", p_hat, t_ref)

    assert out.shape == (batch, ir_width * ir_height, 2)
    assert jnp.allclose(out, ref, atol=1e-4, rtol=1e-4)

    print("KERNEL_OK")
</pallas_src>

<mosaic_0001>
module attributes {stable_mosaic.version = 11 : i64} {
  func.func @grid_gen_kernel(%arg0: memref<2x16xf32, #tpu.memory_space<smem>>, %arg1: memref<16x512xf32, #tpu.memory_space<vmem>>, %arg2: memref<2x512xf32, #tpu.memory_space<vmem>>) attributes {dimension_semantics = [], scalar_prefetch = 0 : i64, scratch_operands = 0 : i64, tpu.core_type = #tpu.core_type<tc>} {
    %c0 = arith.constant 0 : index
    %c0_0 = arith.constant 0 : index
    %0 = memref.load %arg0[%c0, %c0_0] : memref<2x16xf32, #tpu.memory_space<smem>>
    %c0_1 = arith.constant 0 : index
    %c0_2 = arith.constant 0 : index
    %1 = vector.load %arg1[%c0_1, %c0_2] : memref<16x512xf32, #tpu.memory_space<vmem>>, vector<1x512xf32>
    %2 = vector.broadcast %0 : f32 to vector<1x512xf32>
    %3 = arith.mulf %2, %1 : vector<1x512xf32>
    %c0_3 = arith.constant 0 : index
    %c1 = arith.constant 1 : index
    %4 = memref.load %arg0[%c0_3, %c1] : memref<2x16xf32, #tpu.memory_space<smem>>
    %c1_4 = arith.constant 1 : index
    %c0_5 = arith.constant 0 : index
    %5 = vector.load %arg1[%c1_4, %c0_5] : memref<16x512xf32, #tpu.memory_space<vmem>>, vector<1x512xf32>
    %6 = vector.broadcast %4 : f32 to vector<1x512xf32>
    %7 = arith.mulf %6, %5 : vector<1x512xf32>
    %8 = arith.addf %3, %7 : vector<1x512xf32>
    %c0_6 = arith.constant 0 : index
    %c2 = arith.constant 2 : index
    %9 = memref.load %arg0[%c0_6, %c2] : memref<2x16xf32, #tpu.memory_space<smem>>
    %c2_7 = arith.constant 2 : index
    %c0_8 = arith.constant 0 : index
    %10 = vector.load %arg1[%c2_7, %c0_8] : memref<16x512xf32, #tpu.memory_space<vmem>>, vector<1x512xf32>
    %11 = vector.broadcast %9 : f32 to vector<1x512xf32>
    %12 = arith.mulf %11, %10 : vector<1x512xf32>
    %13 = arith.addf %8, %12 : vector<1x512xf32>
    %c0_9 = arith.constant 0 : index
    %c3 = arith.constant 3 : index
    %14 = memref.load %arg0[%c0_9, %c3] : memref<2x16xf32, #tpu.memory_space<smem>>
    %c3_10 = arith.constant 3 : index
    %c0_11 = arith.constant 0 : index
    %15 = vector.load %arg1[%c3_10, %c0_11] : memref<16x512xf32, #tpu.memory_space<vmem>>, vector<1x512xf32>
    %16 = vector.broadcast %14 : f32 to vector<1x512xf32>
    %17 = arith.mulf %16, %15 : vector<1x512xf32>
    %18 = arith.addf %13, %17 : vector<1x512xf32>
    %c0_12 = arith.constant 0 : index
    %c4 = arith.constant 4 : index
    %19 = memref.load %arg0[%c0_12, %c4] : memref<2x16xf32, #tpu.memory_space<smem>>
    %c4_13 = arith.constant 4 : index
    %c0_14 = arith.constant 0 : index
    %20 = vector.load %arg1[%c4_13, %c0_14] : memref<16x512xf32, #tpu.memory_space<vmem>>, vector<1x512xf32>
    %21 = vector.broadcast %19 : f32 to vector<1x512xf32>
    %22 = arith.mulf %21, %20 : vector<1x512xf32>
    %23 = arith.addf %18, %22 : vector<1x512xf32>
    %c0_15 = arith.constant 0 : index
    %c5 = arith.constant 5 : index
    %24 = memref.load %arg0[%c0_15, %c5] : memref<2x16xf32, #tpu.memory_space<smem>>
    %c5_16 = arith.constant 5 : index
    %c0_17 = arith.constant 0 : index
    %25 = vector.load %arg1[%c5_16, %c0_17] : memref<16x512xf32, #tpu.memory_space<vmem>>, vector<1x512xf32>
    %26 = vector.broadcast %24 : f32 to vector<1x512xf32>
    %27 = arith.mulf %26, %25 : vector<1x512xf32>
    %28 = arith.addf %23, %27 : vector<1x512xf32>
    %c0_18 = arith.constant 0 : index
    %c6 = arith.constant 6 : index
    %29 = memref.load %arg0[%c0_18, %c6] : memref<2x16xf32, #tpu.memory_space<smem>>
    %c6_19 = arith.constant 6 : index
    %c0_20 = arith.constant 0 : index
    %30 = vector.load %arg1[%c6_19, %c0_20] : memref<16x512xf32, #tpu.memory_space<vmem>>, vector<1x512xf32>
    %31 = vector.broadcast %29 : f32 to vector<1x512xf32>
    %32 = arith.mulf %31, %30 : vector<1x512xf32>
    %33 = arith.addf %28, %32 : vector<1x512xf32>
    %c0_21 = arith.constant 0 : index
    %c7 = arith.constant 7 : index
    %34 = memref.load %arg0[%c0_21, %c7] : memref<2x16xf32, #tpu.memory_space<smem>>
    %c7_22 = arith.constant 7 : index
    %c0_23 = arith.constant 0 : index
    %35 = vector.load %arg1[%c7_22, %c0_23] : memref<16x512xf32, #tpu.memory_space<vmem>>, vector<1x512xf32>
    %36 = vector.broadcast %34 : f32 to vector<1x512xf32>
    %37 = arith.mulf %36, %35 : vector<1x512xf32>
    %38 = arith.addf %33, %37 : vector<1x512xf32>
    %c0_24 = arith.constant 0 : index
    %c8 = arith.constant 8 : index
    %39 = memref.load %arg0[%c0_24, %c8] : memref<2x16xf32, #tpu.memory_space<smem>>
    %c8_25 = arith.constant 8 : index
    %c0_26 = arith.constant 0 : index
    %40 = vector.load %arg1[%c8_25, %c0_26] : memref<16x512xf32, #tpu.memory_space<vmem>>, vector<1x512xf32>
    %41 = vector.broadcast %39 : f32 to vector<1x512xf32>
    %42 = arith.mulf %41, %40 : vector<1x512xf32>
    %43 = arith.addf %38, %42 : vector<1x512xf32>
    %c0_27 = arith.constant 0 : index
    %c9 = arith.constant 9 : index
    %44 = memref.load %arg0[%c0_27, %c9] : memref<2x16xf32, #tpu.memory_space<smem>>
    %c9_28 = arith.constant 9 : index
    %c0_29 = arith.constant 0 : index
    %45 = vector.load %arg1[%c9_28, %c0_29] : memref<16x512xf32, #tpu.memory_space<vmem>>, vector<1x512xf32>
    %46 = vector.broadcast %44 : f32 to vector<1x512xf32>
    %47 = arith.mulf %46, %45 : vector<1x512xf32>
    %48 = arith.addf %43, %47 : vector<1x512xf32>
    %c0_30 = arith.constant 0 : index
    %c10 = arith.constant 10 : index
    %49 = memref.load %arg0[%c0_30, %c10] : memref<2x16xf32, #tpu.memory_space<smem>>
    %c10_31 = arith.constant 10 : index
    %c0_32 = arith.constant 0 : index
    %50 = vector.load %arg1[%c10_31, %c0_32] : memref<16x512xf32, #tpu.memory_space<vmem>>, vector<1x512xf32>
    %51 = vector.broadcast %49 : f32 to vector<1x512xf32>
    %52 = arith.mulf %51, %50 : vector<1x512xf32>
    %53 = arith.addf %48, %52 : vector<1x512xf32>
    %c0_33 = arith.constant 0 : index
    %c11 = arith.constant 11 : index
    %54 = memref.load %arg0[%c0_33, %c11] : memref<2x16xf32, #tpu.memory_space<smem>>
    %c11_34 = arith.constant 11 : index
    %c0_35 = arith.constant 0 : index
    %55 = vector.load %arg1[%c11_34, %c0_35] : memref<16x512xf32, #tpu.memory_space<vmem>>, vector<1x512xf32>
    %56 = vector.broadcast %54 : f32 to vector<1x512xf32>
    %57 = arith.mulf %56, %55 : vector<1x512xf32>
    %58 = arith.addf %53, %57 : vector<1x512xf32>
    %c0_36 = arith.constant 0 : index
    %c12 = arith.constant 12 : index
    %59 = memref.load %arg0[%c0_36, %c12] : memref<2x16xf32, #tpu.memory_space<smem>>
    %c12_37 = arith.constant 12 : index
    %c0_38 = arith.constant 0 : index
    %60 = vector.load %arg1[%c12_37, %c0_38] : memref<16x512xf32, #tpu.memory_space<vmem>>, vector<1x512xf32>
    %61 = vector.broadcast %59 : f32 to vector<1x512xf32>
    %62 = arith.mulf %61, %60 : vector<1x512xf32>
    %63 = arith.addf %58, %62 : vector<1x512xf32>
    %c0_39 = arith.constant 0 : index
    %c13 = arith.constant 13 : index
    %64 = memref.load %arg0[%c0_39, %c13] : memref<2x16xf32, #tpu.memory_space<smem>>
    %c13_40 = arith.constant 13 : index
    %c0_41 = arith.constant 0 : index
    %65 = vector.load %arg1[%c13_40, %c0_41] : memref<16x512xf32, #tpu.memory_space<vmem>>, vector<1x512xf32>
    %66 = vector.broadcast %64 : f32 to vector<1x512xf32>
    %67 = arith.mulf %66, %65 : vector<1x512xf32>
    %68 = arith.addf %63, %67 : vector<1x512xf32>
    %c0_42 = arith.constant 0 : index
    %c14 = arith.constant 14 : index
    %69 = memref.load %arg0[%c0_42, %c14] : memref<2x16xf32, #tpu.memory_space<smem>>
    %c14_43 = arith.constant 14 : index
    %c0_44 = arith.constant 0 : index
    %70 = vector.load %arg1[%c14_43, %c0_44] : memref<16x512xf32, #tpu.memory_space<vmem>>, vector<1x512xf32>
    %71 = vector.broadcast %69 : f32 to vector<1x512xf32>
    %72 = arith.mulf %71, %70 : vector<1x512xf32>
    %73 = arith.addf %68, %72 : vector<1x512xf32>
    %c0_45 = arith.constant 0 : index
    %c15 = arith.constant 15 : index
    %74 = memref.load %arg0[%c0_45, %c15] : memref<2x16xf32, #tpu.memory_space<smem>>
    %c15_46 = arith.constant 15 : index
    %c0_47 = arith.constant 0 : index
    %75 = vector.load %arg1[%c15_46, %c0_47] : memref<16x512xf32, #tpu.memory_space<vmem>>, vector<1x512xf32>
    %76 = vector.broadcast %74 : f32 to vector<1x512xf32>
    %77 = arith.mulf %76, %75 : vector<1x512xf32>
    %78 = arith.addf %73, %77 : vector<1x512xf32>
    %c0_48 = arith.constant 0 : index
    %c0_49 = arith.constant 0 : index
    %79 = vector.load %arg2[%c0_48, %c0_49] : memref<2x512xf32, #tpu.memory_space<vmem>>, vector<1x512xf32>
    tpu.vector_store %arg2[%c0_48, %c0_49], %78 {strides = array<i32>} : memref<2x512xf32, #tpu.memory_space<vmem>>, vector<1x512xf32>,
    %c1_50 = arith.constant 1 : index
    %c0_51 = arith.constant 0 : index
    %80 = memref.load %arg0[%c1_50, %c0_51] : memref<2x16xf32, #tpu.memory_space<smem>>
    %c0_52 = arith.constant 0 : index
    %c0_53 = arith.constant 0 : index
    %81 = vector.load %arg1[%c0_52, %c0_53] : memref<16x512xf32, #tpu.memory_space<vmem>>, vector<1x512xf32>
    %82 = vector.broadcast %80 : f32 to vector<1x512xf32>
    %83 = arith.mulf %82, %81 : vector<1x512xf32>
    %c1_54 = arith.constant 1 : index
    %c1_55 = arith.constant 1 : index
    %84 = memref.load %arg0[%c1_54, %c1_55] : memref<2x16xf32, #tpu.memory_space<smem>>
    %c1_56 = arith.constant 1 : index
    %c0_57 = arith.constant 0 : index
    %85 = vector.load %arg1[%c1_56, %c0_57] : memref<16x512xf32, #tpu.memory_space<vmem>>, vector<1x512xf32>
    %86 = vector.broadcast %84 : f32 to vector<1x512xf32>
    %87 = arith.mulf %86, %85 : vector<1x512xf32>
    %88 = arith.addf %83, %87 : vector<1x512xf32>
    %c1_58 = arith.constant 1 : index
    %c2_59 = arith.constant 2 : index
    %89 = memref.load %arg0[%c1_58, %c2_59] : memref<2x16xf32, #tpu.memory_space<smem>>
    %c2_60 = arith.constant 2 : index
    %c0_61 = arith.constant 0 : index
    %90 = vector.load %arg1[%c2_60, %c0_61] : memref<16x512xf32, #tpu.memory_space<vmem>>, vector<1x512xf32>
    %91 = vector.broadcast %89 : f32 to vector<1x512xf32>
    %92 = arith.mulf %91, %90 : vector<1x512xf32>
    %93 = arith.addf %88, %92 : vector<1x512xf32>
    %c1_62 = arith.constant 1 : index
    %c3_63 = arith.constant 3 : index
    %94 = memref.load %arg0[%c1_62, %c3_63] : memref<2x16xf32, #tpu.memory_space<smem>>
    %c3_64 = arith.constant 3 : index
    %c0_65 = arith.constant 0 : index
    %95 = vector.load %arg1[%c3_64, %c0_65] : memref<16x512xf32, #tpu.memory_space<vmem>>, vector<1x512xf32>
    %96 = vector.broadcast %94 : f32 to vector<1x512xf32>
    %97 = arith.mulf %96, %95 : vector<1x512xf32>
    %98 = arith.addf %93, %97 : vector<1x512xf32>
    %c1_66 = arith.constant 1 : index
    %c4_67 = arith.constant 4 : index
    %99 = memref.load %arg0[%c1_66, %c4_67] : memref<2x16xf32, #tpu.memory_space<smem>>
    %c4_68 = arith.constant 4 : index
    %c0_69 = arith.constant 0 : index
    %100 = vector.load %arg1[%c4_68, %c0_69] : memref<16x512xf32, #tpu.memory_space<vmem>>, vector<1x512xf32>
    %101 = vector.broadcast %99 : f32 to vector<1x512xf32>
    %102 = arith.mulf %101, %100 : vector<1x512xf32>
    %103 = arith.addf %98, %102 : vector<1x512xf32>
    %c1_70 = arith.constant 1 : index
    %c5_71 = arith.constant 5 : index
    %104 = memref.load %arg0[%c1_70, %c5_71] : memref<2x16xf32, #tpu.memory_space<smem>>
    %c5_72 = arith.constant 5 : index
    %c0_73 = arith.constant 0 : index
    %105 = vector.load %arg1[%c5_72, %c0_73] : memref<16x512xf32, #tpu.memory_space<vmem>>, vector<1x512xf32>
    %106 = vector.broadcast %104 : f32 to vector<1x512xf32>
    %107 = arith.mulf %106, %105 : vector<1x512xf32>
    %108 = arith.addf %103, %107 : vector<1x512xf32>
    %c1_74 = arith.constant 1 : index
    %c6_75 = arith.constant 6 : index
    %109 = memref.load %arg0[%c1_74, %c6_75] : memref<2x16xf32, #tpu.memory_space<smem>>
    %c6_76 = arith.constant 6 : index
    %c0_77 = arith.constant 0 : index
    %110 = vector.load %arg1[%c6_76, %c0_77] : memref<16x512xf32, #tpu.memory_space<vmem>>, vector<1x512xf32>
    %111 = vector.broadcast %109 : f32 to vector<1x512xf32>
    %112 = arith.mulf %111, %110 : vector<1x512xf32>
    %113 = arith.addf %108, %112 : vector<1x512xf32>
    %c1_78 = arith.constant 1 : index
    %c7_79 = arith.constant 7 : index
    %114 = memref.load %arg0[%c1_78, %c7_79] : memref<2x16xf32, #tpu.memory_space<smem>>
    %c7_80 = arith.constant 7 : index
    %c0_81 = arith.constant 0 : index
    %115 = vector.load %arg1[%c7_80, %c0_81] : memref<16x512xf32, #tpu.memory_space<vmem>>, vector<1x512xf32>
    %116 = vector.broadcast %114 : f32 to vector<1x512xf32>
    %117 = arith.mulf %116, %115 : vector<1x512xf32>
    %118 = arith.addf %113, %117 : vector<1x512xf32>
    %c1_82 = arith.constant 1 : index
    %c8_83 = arith.constant 8 : index
    %119 = memref.load %arg0[%c1_82, %c8_83] : memref<2x16xf32, #tpu.memory_space<smem>>
    %c8_84 = arith.constant 8 : index
    %c0_85 = arith.constant 0 : index
    %120 = vector.load %arg1[%c8_84, %c0_85] : memref<16x512xf32, #tpu.memory_space<vmem>>, vector<1x512xf32>
    %121 = vector.broadcast %119 : f32 to vector<1x512xf32>
    %122 = arith.mulf %121, %120 : vector<1x512xf32>
    %123 = arith.addf %118, %122 : vector<1x512xf32>
    %c1_86 = arith.constant 1 : index
    %c9_87 = arith.constant 9 : index
    %124 = memref.load %arg0[%c1_86, %c9_87] : memref<2x16xf32, #tpu.memory_space<smem>>
    %c9_88 = arith.constant 9 : index
    %c0_89 = arith.constant 0 : index
    %125 = vector.load %arg1[%c9_88, %c0_89] : memref<16x512xf32, #tpu.memory_space<vmem>>, vector<1x512xf32>
    %126 = vector.broadcast %124 : f32 to vector<1x512xf32>
    %127 = arith.mulf %126, %125 : vector<1x512xf32>
    %128 = arith.addf %123, %127 : vector<1x512xf32>
    %c1_90 = arith.constant 1 : index
    %c10_91 = arith.constant 10 : index
    %129 = memref.load %arg0[%c1_90, %c10_91] : memref<2x16xf32, #tpu.memory_space<smem>>
    %c10_92 = arith.constant 10 : index
    %c0_93 = arith.constant 0 : index
    %130 = vector.load %arg1[%c10_92, %c0_93] : memref<16x512xf32, #tpu.memory_space<vmem>>, vector<1x512xf32>
    %131 = vector.broadcast %129 : f32 to vector<1x512xf32>
    %132 = arith.mulf %131, %130 : vector<1x512xf32>
    %133 = arith.addf %128, %132 : vector<1x512xf32>
    %c1_94 = arith.constant 1 : index
    %c11_95 = arith.constant 11 : index
    %134 = memref.load %arg0[%c1_94, %c11_95] : memref<2x16xf32, #tpu.memory_space<smem>>
    %c11_96 = arith.constant 11 : index
    %c0_97 = arith.constant 0 : index
    %135 = vector.load %arg1[%c11_96, %c0_97] : memref<16x512xf32, #tpu.memory_space<vmem>>, vector<1x512xf32>
    %136 = vector.broadcast %134 : f32 to vector<1x512xf32>
    %137 = arith.mulf %136, %135 : vector<1x512xf32>
    %138 = arith.addf %133, %137 : vector<1x512xf32>
    %c1_98 = arith.constant 1 : index
    %c12_99 = arith.constant 12 : index
    %139 = memref.load %arg0[%c1_98, %c12_99] : memref<2x16xf32, #tpu.memory_space<smem>>
    %c12_100 = arith.constant 12 : index
    %c0_101 = arith.constant 0 : index
    %140 = vector.load %arg1[%c12_100, %c0_101] : memref<16x512xf32, #tpu.memory_space<vmem>>, vector<1x512xf32>
    %141 = vector.broadcast %139 : f32 to vector<1x512xf32>
    %142 = arith.mulf %141, %140 : vector<1x512xf32>
    %143 = arith.addf %138, %142 : vector<1x512xf32>
    %c1_102 = arith.constant 1 : index
    %c13_103 = arith.constant 13 : index
    %144 = memref.load %arg0[%c1_102, %c13_103] : memref<2x16xf32, #tpu.memory_space<smem>>
    %c13_104 = arith.constant 13 : index
    %c0_105 = arith.constant 0 : index
    %145 = vector.load %arg1[%c13_104, %c0_105] : memref<16x512xf32, #tpu.memory_space<vmem>>, vector<1x512xf32>
    %146 = vector.broadcast %144 : f32 to vector<1x512xf32>
    %147 = arith.mulf %146, %145 : vector<1x512xf32>
    %148 = arith.addf %143, %147 : vector<1x512xf32>
    %c1_106 = arith.constant 1 : index
    %c14_107 = arith.constant 14 : index
    %149 = memref.load %arg0[%c1_106, %c14_107] : memref<2x16xf32, #tpu.memory_space<smem>>
    %c14_108 = arith.constant 14 : index
    %c0_109 = arith.constant 0 : index
    %150 = vector.load %arg1[%c14_108, %c0_109] : memref<16x512xf32, #tpu.memory_space<vmem>>, vector<1x512xf32>
    %151 = vector.broadcast %149 : f32 to vector<1x512xf32>
    %152 = arith.mulf %151, %150 : vector<1x512xf32>
    %153 = arith.addf %148, %152 : vector<1x512xf32>
    %c1_110 = arith.constant 1 : index
    %c15_111 = arith.constant 15 : index
    %154 = memref.load %arg0[%c1_110, %c15_111] : memref<2x16xf32, #tpu.memory_space<smem>>
    %c15_112 = arith.constant 15 : index
    %c0_113 = arith.constant 0 : index
    %155 = vector.load %arg1[%c15_112, %c0_113] : memref<16x512xf32, #tpu.memory_space<vmem>>, vector<1x512xf32>
    %156 = vector.broadcast %154 : f32 to vector<1x512xf32>
    %157 = arith.mulf %156, %155 : vector<1x512xf32>
    %158 = arith.addf %153, %157 : vector<1x512xf32>
    %c1_114 = arith.constant 1 : index
    %c0_115 = arith.constant 0 : index
    %159 = vector.load %arg2[%c1_114, %c0_115] : memref<2x512xf32, #tpu.memory_space<vmem>>, vector<1x512xf32>
    tpu.vector_store %arg2[%c1_114, %c0_115], %158 {strides = array<i32>} : memref<2x512xf32, #tpu.memory_space<vmem>>, vector<1x512xf32>,
    return
  }
}

</mosaic_0001>

<bundles_post_ra>
// kernel: tpu_custom_call.1
= control target key start
LH: loop header
LB: loop body
LE: loop exit
PB: predicated region body
PF: predicated region fallthrough
CT: control target
= control target key end

     0   :  { %7 = vsyncpa [#allocation5], 0  ;;  %s420_s0 = inlined_call_operand.hbm [shape: f32[2,16], index: 0, kind: input, shape index: {}]   ;;  %s421_s1 = inlined_call_operand.hbm [shape: f32[16,512], index: 1, kind: input, shape index: {}]   ;;  %s422_s2 = inlined_call_operand.hbm [shape: f32[2,512], index: 2, kind: output, shape index: {}]  }
   0x1   :  { %8 = vsyncpa [#allocation3], 0 }
   0x2   :  { %9 = vsyncpa [#allocation4], 0  ;;  %s323_s9 = smov [#allocation2]   ;;  %s324_s12 = smov [#allocation6]  }
   0x3   :  { %17 = dma.hbm_to_smem %s420_s0, 32, %s323_s9, [#allocation5]  }
   0x4   :  { %s23_s13 = sshll.u32 %s324_s12, 4  ;;  %s24_s13 = int_to_ptr.vmem [resolvable:$true] %s23_s13 }
   0x5   :  { %s285_s14 = scalar_lea.vmem %s24_s13, 1024  ;;  %p290_p1 = scmp.lt.s32.totalorder %s24_s13, %s24_s13 }
   0x6   :  { %p286_p0 = scmp.ne.s32.totalorder %s24_s13, %s285_s14  ;;  %p291_p2 = scmp.lt.s32.totalorder %s285_s14, %s285_s14 }
   0x8   :  { %p292_p3 = por %p291_p2, %p290_p1 }
   0xa   :  { %p293_p4 = pnand %p292_p3, %p286_p0 }
   0xc   :  { %296 = shalt.err (!%p293_p4)
}
   0xd   :  { %s325_s15 = smov 512   ;;  %s326_s16 = smov 32  }
   0xe   :  { %29 = dma.hbm_to_vmem [thread:$0]  %s421_s1, 1024, %s24_s13, [#allocation3], %s325_s15, %s325_s15, %s326_s16  }
   0xf   :  { %317 = dma.done.wait [#allocation5], 32  }
  0x10   :  { %318 = vsyncadd [#allocation5], 4294967264 }
  0x11   :  { %319 = dma.done.wait [#allocation3], 1024  }
  0x12   :  { %320 = vsyncadd [#allocation3], 4294966272 }
  0x13   :  { %36 = sfence }
  0x14   :  { %s37_s0 = sld [smem:[#allocation2]]  ;;  %v38_v0 = vld [vmem:[#allocation6] ss:$8 sm:$0xf] }
  0x15   :  { %s233_s19 = sld [smem:[#allocation2 + $0x1]]  ;;  %v43_v1 = vld [vmem:[#allocation6 + $0x1] ss:$8 sm:$0xf] }
  0x16   :  { %s234_s20 = sld [smem:[#allocation2 + $0x2]]  ;;  %v49_v3 = vld [vmem:[#allocation6 + $0x2] ss:$8 sm:$0xf] }
  0x17   :  { %s235_s21 = sld [smem:[#allocation2 + $0x3]]  ;;  %v55_v6 = vld [vmem:[#allocation6 + $0x3] ss:$8 sm:$0xf] }
  0x18   :  { %s236_s22 = sld [smem:[#allocation2 + $0x4]]  ;;  %v61_v11 = vld [vmem:[#allocation6 + $0x4] ss:$8 sm:$0xf] }
  0x19   :  { %s237_s23 = sld [smem:[#allocation2 + $0x5]]  ;;  %v67_v15 = vld [vmem:[#allocation6 + $0x5] ss:$8 sm:$0xf] }
  0x1a   :  { %v39_v2 = vstv %s37_s0  ;;  %s349_s24 = sld [smem:[#allocation2 + $0x6]]  ;;  %v73_v19 = vld [vmem:[#allocation6 + $0x6] ss:$8 sm:$0xf] }
  0x1b   :  { %v40_v4 = vmul.f32 %v39_v2, %v38_v0  ;;  %v44_v5 = vstv %s233_s19  ;;  %s351_s1 = sld [smem:[#allocation2 + $0x7]]  ;;  %v79_v23 = vld [vmem:[#allocation6 + $0x7] ss:$8 sm:$0xf] }
  0x1c   :  { %v45_v7 = vmul.f32 %v44_v5, %v43_v1  ;;  %v50_v8 = vstv %s234_s20  ;;  %s353_s25 = sld [smem:[#allocation2 + $0x8]]  ;;  %v85_v27 = vld [vmem:[#allocation6 + $0x20] ss:$8 sm:$0xf]  ;;  %s327_s20 = smov [#allocation7]  }
  0x1d   :  { %v51_v9 = vmul.f32 %v50_v8, %v49_v3  ;;  %v56_v10 = vstv %s235_s21  ;;  %s355_s26 = sld [smem:[#allocation2 + $0x9]]  ;;  %v91_v31 = vld [vmem:[#allocation6 + $0x21] ss:$8 sm:$0xf]  ;;  %s223_s21 = sshll.u32 %s327_s20, 4  ;;  %s224_s21 = int_to_ptr.vmem [resolvable:$true] %s223_s21 }
  0x1e   :  { %v46_v12 = vadd.f32 %v45_v7, %v40_v4  ;;  %v57_v13 = vmul.f32 %v56_v10, %v55_v6  ;;  %v62_v14 = vstv %s236_s22  ;;  %s357_s27 = sld [smem:[#allocation2 + $0xa]]  ;;  %v97_v33 = vld [vmem:[#allocation6 + $0x22] ss:$8 sm:$0xf]  ;;  %s297_s22 = scalar_lea.vmem %s224_s21, 128 }
  0x1f   :  { %v68_v16 = vstv %s237_s23  ;;  %s359_s28 = sld [smem:[#allocation2 + $0xb]]  ;;  %v63_v18 = vmul.f32 %v62_v14, %v61_v11  ;;  %v103_v36 = vld [vmem:[#allocation6 + $0x23] ss:$8 sm:$0xf]  ;;  %p298_p5 = scmp.ne.s32.totalorder %s224_s21, %s297_s22 }
  0x20   :  { %v52_v17 = vadd.f32 %v51_v9, %v46_v12  ;;  %s361_s29 = sld [smem:[#allocation2 + $0xc]]  ;;  %v74_v20 = vstv %s349_s24  ;;  %v69_v22 = vmul.f32 %v68_v16, %v67_v15  ;;  %v137_v37 = vld [vmem:[#allocation6] ss:$8 sm:$0xf]  ;;  %p302_p6 = scmp.lt.s32.totalorder %s224_s21, %s224_s21 }
  0x21   :  { %s364_s30 = sld [smem:[#allocation2 + $0xd]]  ;;  %v80_v24 = vstv %s351_s1  ;;  %v75_v26 = vmul.f32 %v74_v20, %v73_v19  ;;  %v141_v39 = vld [vmem:[#allocation6 + $0x1] ss:$8 sm:$0xf]  ;;  %p303_p7 = scmp.lt.s32.totalorder %s297_s22, %s297_s22 }
  0x22   :  { %v58_v21 = vadd.f32 %v57_v13, %v52_v17  ;;  %s366_s3 = sld [smem:[#allocation2 + $0xe]]  ;;  %v86_v28 = vstv %s353_s25  ;;  %v81_v30 = vmul.f32 %v80_v24, %v79_v23  ;;  %v146_v44 = vld [vmem:[#allocation6 + $0x2] ss:$8 sm:$0xf] }
  0x23   :  { %s369_s4 = sld [smem:[#allocation2 + $0xf]]  ;;  %v92_v32 = vstv %s355_s26  ;;  %v87_v35 = vmul.f32 %v86_v28, %v85_v27  ;;  %v151_v47 = vld [vmem:[#allocation6 + $0x3] ss:$8 sm:$0xf]  ;;  %p304_p8 = por %p303_p7, %p302_p6 }
  0x24   :  { %v64_v25 = vadd.f32 %v63_v18, %v58_v21  ;;  %s248_s5 = sld [smem:[#allocation2 + $0x80]]  ;;  %v98_v38 = vstv %s357_s27  ;;  %v93_v41 = vmul.f32 %v92_v32, %v91_v31  ;;  %v109_v50 = vld [vmem:[#allocation6 + $0x24] ss:$8 sm:$0xf] }
  0x25   :  { %s249_s6 = sld [smem:[#allocation2 + $0x81]]  ;;  %v104_v42 = vstv %s359_s28  ;;  %v99_v49 = vmul.f32 %v98_v38, %v97_v33  ;;  %v156_v57 = vld [vmem:[#allocation6 + $0x4] ss:$8 sm:$0xf]  ;;  %p305_p9 = pnand %p304_p8, %p298_p5 }
  0x26   :  { %v70_v29 = vadd.f32 %v69_v22, %v64_v25  ;;  %s250_s7 = sld [smem:[#allocation2 + $0x82]]  ;;  %v105_v53 = vmul.f32 %v104_v42, %v103_v36  ;;  %v110_v54 = vstv %s361_s29  ;;  %v115_v59 = vld [vmem:[#allocation6 + $0x25] ss:$8 sm:$0xf]  ;;  %v131_v22 = vlaneseq }
  0x27   :  { %s373_s8 = sld [smem:[#allocation2 + $0x83]]  ;;  %v116_v63 = vstv %s364_s30  ;;  %v161_v0 = vld [vmem:[#allocation6 + $0x5] ss:$8 sm:$0xf]  ;;  %v111_v3 = vmul.f32 %v110_v54, %v109_v50 }
  0x28   :  { %v76_v34 = vadd.f32 %v75_v26, %v70_v29  ;;  %s375_s9 = sld [smem:[#allocation2 + $0x84]]  ;;  %v121_v4 = vld [vmem:[#allocation6 + $0x26] ss:$8 sm:$0xf]  ;;  %v122_v7 = vstv %s366_s3  ;;  %v117_v11 = vmul.f32 %v116_v63, %v115_v59  ;;  %vm406_vm0 = vcmp.lt.s32.totalorder %v131_v22, 512 }
  0x29   :  { %s378_s10 = sld [smem:[#allocation2 + $0x85]]  ;;  %v166_v8 = vld [vmem:[#allocation6 + $0x6] ss:$8 sm:$0xf]  ;;  %v128_v15 = vstv %s369_s4  ;;  %v123_v19 = vmul.f32 %v122_v7, %v121_v4 }
  0x2a   :  { %v82_v40 = vadd.f32 %v81_v30, %v76_v34  ;;  %v138_v43 = vstv %s248_s5  ;;  %s381_s11 = sld [smem:[#allocation2 + $0x86]]  ;;  %v127_v12 = vld [vmem:[#allocation6 + $0x27] ss:$8 sm:$0xf] }
  0x2b   :  { %v139_v45 = vmul.f32 %v138_v43, %v137_v37  ;;  %v142_v46 = vstv %s249_s6  ;;  %s383_s12 = sld [smem:[#allocation2 + $0x87]]  ;;  %v171_v16 = vld [vmem:[#allocation6 + $0x7] ss:$8 sm:$0xf]  ;;  %v129_v26 = vmul.f32 %v128_v15, %v127_v12 }
  0x2c   :  { %v88_v48 = vadd.f32 %v87_v35, %v82_v40  ;;  %v143_v51 = vmul.f32 %v142_v46, %v141_v39  ;;  %v147_v52 = vstv %s250_s7  ;;  %s387_s13 = sld [smem:[#allocation2 + $0x88]]  ;;  %v176_v23 = vld [vmem:[#allocation6 + $0x20] ss:$8 sm:$0xf] }
  0x2d   :  { %v148_v55 = vmul.f32 %v147_v52, %v146_v44  ;;  %v152_v56 = vstv %s373_s8  ;;  %s392_s14 = sld [smem:[#allocation2 + $0x89]]  ;;  %v181_v29 = vld [vmem:[#allocation6 + $0x21] ss:$8 sm:$0xf] }
  0x2e   :  { %v94_v58 = vadd.f32 %v93_v41, %v88_v48  ;;  %v144_v60 = vadd.f32 %v143_v51, %v139_v45  ;;  %v153_v61 = vmul.f32 %v152_v56, %v151_v47  ;;  %v157_v62 = vstv %s375_s9  ;;  %s396_s15 = sld [smem:[#allocation2 + $0x8a]]  ;;  %v186_v35 = vld [vmem:[#allocation6 + $0x22] ss:$8 sm:$0xf] }
  0x2f   :  { %v162_v1 = vstv %s378_s10  ;;  %v158_v6 = vmul.f32 %v157_v62, %v156_v57  ;;  %s400_s16 = sld [smem:[#allocation2 + $0x8b]]  ;;  %v191_v40 = vld [vmem:[#allocation6 + $0x23] ss:$8 sm:$0xf] }
  0x30   :  { %v100_v2 = vadd.f32 %v99_v49, %v94_v58  ;;  %v149_v5 = vadd.f32 %v148_v55, %v144_v60  ;;  %v167_v9 = vstv %s381_s11  ;;  %v163_v14 = vmul.f32 %v162_v1, %v161_v0  ;;  %s403_s17 = sld [smem:[#allocation2 + $0x8c]]  ;;  %v196_v44 = vld [vmem:[#allocation6 + $0x24] ss:$8 sm:$0xf] }
  0x31   :  { %v172_v17 = vstv %s383_s12  ;;  %v168_v21 = vmul.f32 %v167_v9, %v166_v8  ;;  %s261_s18 = sld [smem:[#allocation2 + $0x8d]]  ;;  %v201_v48 = vld [vmem:[#allocation6 + $0x25] ss:$8 sm:$0xf] }
  0x32   :  { %v106_v10 = vadd.f32 %v105_v53, %v100_v2  ;;  %v154_v13 = vadd.f32 %v153_v61, %v149_v5  ;;  %v177_v24 = vstv %s387_s13  ;;  %v173_v28 = vmul.f32 %v172_v17, %v171_v16  ;;  %s262_s0 = sld [smem:[#allocation2 + $0x8e]]  ;;  %v206_v52 = vld [vmem:[#allocation6 + $0x26] ss:$8 sm:$0xf] }
  0x33   :  { %v182_v30 = vstv %s392_s14  ;;  %v178_v33 = vmul.f32 %v177_v24, %v176_v23  ;;  %s263_s19 = sld [smem:[#allocation2 + $0x8f]]  ;;  %v211_v56 = vld [vmem:[#allocation6 + $0x27] ss:$8 sm:$0xf] }
  0x34   :  { %v112_v18 = vadd.f32 %v111_v3, %v106_v10  ;;  %v159_v20 = vadd.f32 %v158_v6, %v154_v13  ;;  %v187_v36 = vstv %s396_s15  ;;  %v183_v39 = vmul.f32 %v182_v30, %v181_v29 }
  0x35   :  { %v192_v41 = vstv %s400_s16  ;;  %v188_v43 = vmul.f32 %v187_v36, %v186_v35 }
  0x36   :  { %v118_v25 = vadd.f32 %v117_v11, %v112_v18  ;;  %v164_v27 = vadd.f32 %v163_v14, %v159_v20  ;;  %v197_v45 = vstv %s403_s17  ;;  %v193_v47 = vmul.f32 %v192_v41, %v191_v40 }
  0x37   :  { %v202_v49 = vstv %s261_s18  ;;  %v198_v51 = vmul.f32 %v197_v45, %v196_v44 }
  0x38   :  { %v124_v31 = vadd.f32 %v123_v19, %v118_v25  ;;  %v169_v32 = vadd.f32 %v168_v21, %v164_v27  ;;  %v207_v53 = vstv %s262_s0  ;;  %v203_v55 = vmul.f32 %v202_v49, %v201_v48 }
  0x39   :  { %v212_v57 = vstv %s263_s19  ;;  %v208_v59 = vmul.f32 %v207_v53, %v206_v52 }
  0x3a   :  { %v130_v37 = vadd.f32 %v129_v26, %v124_v31  ;;  %v174_v38 = vadd.f32 %v173_v28, %v169_v32  ;;  %v213_v61 = vmul.f32 %v212_v57, %v211_v56 }
  0x3c   :  { %135 = vst.msk [vmem:[#allocation7] ss:$2 sm:$0xf] %vm406_vm0, %v130_v37  ;;  %v179_v42 = vadd.f32 %v178_v33, %v174_v38 }
  0x3e   :  { %v184_v46 = vadd.f32 %v183_v39, %v179_v42 }
  0x40   :  { %v189_v50 = vadd.f32 %v188_v43, %v184_v46 }
  0x42   :  { %v194_v54 = vadd.f32 %v193_v47, %v189_v50 }
  0x44   :  { %v199_v58 = vadd.f32 %v198_v51, %v194_v54 }
  0x46   :  { %v204_v60 = vadd.f32 %v203_v55, %v199_v58 }
  0x48   :  { %v209_v62 = vadd.f32 %v208_v59, %v204_v60 }
  0x4a   :  { %v214_v63 = vadd.f32 %v213_v61, %v209_v62 }
  0x4c   :  { %216 = vst.msk [vmem:[#allocation7 + $0x1] ss:$2 sm:$0xf] %vm406_vm0, %v214_v63 }
  0x4d   :  { %308 = shalt.err (!%p305_p9)
}
  0x4e   :  { %226 = dma.vmem_to_hbm [thread:$0]  %s224_s21, 128, %s422_s2, [#allocation4]  }
  0x4f   :  { %321 = dma.done.wait [#allocation4], 128  }
  0x50   :  { %322 = vsyncadd [#allocation4], 4294967168 }
  0x51   :  { %230 = vsyncpa [#allocation3], 1 }
  0x52   :  { %231 = vsyncpa [#allocation4], 1 }
  0x53   :  { %232 = vsyncpa [#allocation5], 1 }

</bundles_post_ra>
